<compile_context>
chip_gen: v5e
topology: v5e:2x2
jax: 0.10.0
libtpu: 0.0.40
codegen_flags: <defaults>
</compile_context>

<pallas_src>
import functools

import jax
import jax.numpy as jnp
import numpy as np
from jax.experimental import pallas as pl
from jax.experimental.pallas import tpu as pltpu


def _cdiv(a, b):
    return -(-a // b)


def _round_up(a, b):
    return _cdiv(a, b) * b


def _label_smoothing_kernel(x_ref, tgt_ref, out_ref, acc_ref, *,
                            smoothing, n_valid, c_valid):
    p = pl.program_id(0)            # parallel (partial-sum / core-split) axis
    t = pl.program_id(1)            # reduction axis over row tiles
    t_steps = pl.num_programs(1)

    @pl.when(t == 0)
    def _():
        acc_ref[...] = jnp.zeros_like(acc_ref)

    x = x_ref[...].astype(jnp.float32)          # (tile_n, c_pad) logits, f32
    tgt = tgt_ref[...]                          # (tile_n, 1) int32
    tile_n, c_pad = x.shape

    # One (1, c_pad) class iota, reused for the lane-padding mask and the
    # target one-hot pick (no full-tile int32 iota is materialized).
    class_iota = jax.lax.broadcasted_iota(jnp.int32, (1, c_pad), 1)
    if c_pad != c_valid:
        valid_c = class_iota < c_valid                          # (1, c_pad)
        x = jnp.where(valid_c, x, jnp.float32(-1e30))           # mask pad lanes

    # log-softmax pieces -- logp itself is never built.
    m = jnp.max(x, axis=-1, keepdims=True)                      # (tile_n, 1)
    shifted = x - m
    lse = jnp.log(jnp.sum(jnp.exp(shifted), axis=-1, keepdims=True))

    # shifted[row, target[row]]  (exactly one valid match per row)
    onehot = class_iota == tgt                                  # (tile_n, c_pad)
    picked_shift = jnp.sum(jnp.where(onehot, shifted, 0.0),
                           axis=-1, keepdims=True)              # (tile_n, 1)

    confidence = 1.0 - smoothing
    # per_row = conf*nll + s*smooth
    #         = lse - conf*shifted[tgt] - (s/C)*sum_validclasses(shifted)
    per_row = lse - confidence * picked_shift
    if smoothing != 0.0:
        if c_pad != c_valid:
            rowsum_shift = jnp.sum(jnp.where(valid_c, shifted, 0.0),
                                   axis=-1, keepdims=True)
        else:
            rowsum_shift = jnp.sum(shifted, axis=-1, keepdims=True)
        per_row = per_row - (smoothing / c_valid) * rowsum_shift

    # Mask ragged / padded rows so they contribute nothing.
    row0 = (p * t_steps + t) * tile_n
    row_ids = row0 + jax.lax.broadcasted_iota(jnp.int32, (tile_n, 1), 0)
    per_row = jnp.where(row_ids < n_valid, per_row, 0.0)

    acc_ref[...] += jnp.sum(per_row, axis=(0, 1), keepdims=True)

    @pl.when(t == t_steps - 1)
    def _():
        out_ref[...] = jnp.broadcast_to(acc_ref[...], out_ref.shape)


def label_smoothing_loss(x, target, *, smoothing=0.0, tile_n=None,
                         num_partials=None):
    """Pallas implementation of LabelSmoothing.forward.

    x:       (N, C) float logits (any float dtype; bf16 inputs halve HBM traffic
             and are upcast to f32 inside the kernel)
    target:  (N,)   int class indices
    """
    assert 0.0 <= smoothing < 1.0
    N, C = x.shape

    # Lane-dense class padding (multiple of 128).
    c_pad = max(128, _round_up(C, 128))

    # --- generation-aware hardware heuristics -------------------------------
    isz = jnp.dtype(x.dtype).itemsize
    pack = max(8, 8 * (4 // max(1, isz)))        # 8 f32 / 16 bf16 / 32 int8 rows

    kind = ""
    try:
        kind = jax.devices()[0].device_kind.lower()
    except Exception:
        pass
    is_v7 = "v7" in kind
    try:
        vmem_cap = int(pltpu.get_tpu_info().vmem_capacity_bytes)
    except Exception:
        vmem_cap = (64 if is_v7 else 128) * 2**20
    vmem_budget = (3 * vmem_cap) // 4            # ~48 MiB v7x, ~96 MiB v5e/v6e

    if num_partials is None:
        num_partials = 2 if is_v7 else 1         # one partial per TensorCore

    # --- row tile: target ~6 MiB of native-dtype logits per DMA buffer ------
    # Estimated per-row VMEM footprint: 2 double-buffered native tiles
    # + ~4 f32 full-tile temporaries inside the compute.
    per_row_bytes = c_pad * (2 * isz + 4 * 4)
    if tile_n is None:
        target_dma = 6 * 2**20
        tile_n = max(pack, (target_dma // (isz * c_pad) // pack) * pack)
        # Don't tile far beyond the actual row count (avoids useless padding).
        tile_n = min(tile_n, _round_up(max(N, pack), pack))
        # Keep the estimated working set inside the VMEM budget.
        max_tile = max(pack, (vmem_budget // 2 // per_row_bytes // pack) * pack)
        tile_n = min(tile_n, max_tile)
    tile_n = max(pack, _round_up(int(tile_n), pack))

    tiles_total = _cdiv(N, tile_n)
    p_parts = max(1, min(int(num_partials), tiles_total))   # partial sums
    t_steps = _cdiv(tiles_total, p_parts)
    n_pad = p_parts * t_steps * tile_n

    x_p = x
    if (n_pad != N) or (c_pad != C):
        x_p = jnp.pad(x, ((0, n_pad - N), (0, c_pad - C)))
    tgt = target.astype(jnp.int32).reshape(N, 1)
    if n_pad != N:
        tgt = jnp.pad(tgt, ((0, n_pad - N), (0, 0)))

    kernel = functools.partial(
        _label_smoothing_kernel,
        smoothing=float(smoothing), n_valid=int(N), c_valid=int(C),
    )

    est_vmem = tile_n * per_row_bytes + (1 << 22)
    vmem_limit = int(min(vmem_budget, max(32 * 2**20, 2 * est_vmem)))

    cost = pl.CostEstimate(
        flops=8 * n_pad * c_pad,
        transcendentals=n_pad * c_pad + n_pad,               # exp/elem + log/row
        bytes_accessed=n_pad * c_pad * isz + n_pad * 4 + p_parts * 8 * 128 * 4,
    )

    partials = pl.pallas_call(
        kernel,
        out_shape=jax.ShapeDtypeStruct((p_parts * 8, 128), jnp.float32),
        grid_spec=pltpu.PrefetchScalarGridSpec(
            num_scalar_prefetch=0,
            grid=(p_parts, t_steps),
            in_specs=[
                pl.BlockSpec((tile_n, c_pad), lambda p, t: (p * t_steps + t, 0)),
                pl.BlockSpec((tile_n, 1), lambda p, t: (p * t_steps + t, 0)),
            ],
            out_specs=pl.BlockSpec((8, 128), lambda p, t: (p, 0)),
            scratch_shapes=[pltpu.VMEM((1, 1), jnp.float32)],
        ),
        compiler_params=pltpu.CompilerParams(
            dimension_semantics=("parallel", "arbitrary"),
            vmem_limit_bytes=vmem_limit,
        ),
        cost_estimate=cost,
    )(x_p, tgt)

    # Epilogue: sum the per-core partials and divide by N exactly once.
    return jnp.sum(partials[0::8, 0]) / N


def _reference_loss(x, target, smoothing):
    """Pure-JAX mirror of the PyTorch LabelSmoothing.forward."""
    logp = jax.nn.log_softmax(x.astype(jnp.float32), axis=-1)
    nll = -jnp.take_along_axis(logp, target[:, None].astype(jnp.int32), axis=-1)[:, 0]
    smooth = -jnp.mean(logp, axis=-1)
    return jnp.mean((1.0 - smoothing) * nll + smoothing * smooth)


if __name__ == "__main__":
    key = jax.random.PRNGKey(0)
    k1, k2, k3, k4, k5, k6 = jax.random.split(key, 6)

    # Config 1: small forced tiling — exercises class padding (C=32 -> 128),
    # ragged rows, multi-step accumulation (t_steps=2) and a 2-partial split.
    N1, C1, s1 = 20, 32, 0.1
    x1 = jax.random.normal(k1, (N1, C1), dtype=jnp.float32)
    t1 = jax.random.randint(k2, (N1,), 0, C1, dtype=jnp.int32)
    out1 = jax.block_until_ready(
        label_smoothing_loss(x1, t1, smoothing=s1, tile_n=8, num_partials=2))
    ref1 = _reference_loss(x1, t1, s1)
    np.testing.assert_allclose(np.asarray(out1), np.asarray(ref1), rtol=1e-5, atol=1e-5)

    # Config 2: default tile / partial selection, non-multiple-of-128 classes,
    # zero smoothing (rowsum path elided at trace time).
    N2, C2, s2 = 64, 200, 0.0
    x2 = jax.random.normal(k3, (N2, C2), dtype=jnp.float32)
    t2 = jax.random.randint(k4, (N2,), 0, C2, dtype=jnp.int32)
    out2 = jax.block_until_ready(label_smoothing_loss(x2, t2, smoothing=s2))
    ref2 = _reference_loss(x2, t2, s2)
    np.testing.assert_allclose(np.asarray(out2), np.asarray(ref2), rtol=1e-5, atol=1e-5)

    # Config 3: bf16 logits (native-dtype DMA path), ragged rows, several
    # row-tile steps with default partial selection.
    N3, C3, s3 = 300, 200, 0.2
    x3 = jax.random.normal(k5, (N3, C3), dtype=jnp.bfloat16)
    t3 = jax.random.randint(k6, (N3,), 0, C3, dtype=jnp.int32)
    out3 = jax.block_until_ready(label_smoothing_loss(x3, t3, smoothing=s3, tile_n=64))
    ref3 = _reference_loss(x3, t3, s3)
    np.testing.assert_allclose(np.asarray(out3), np.asarray(ref3), rtol=1e-5, atol=1e-5)

    print("KERNEL_OK")
</pallas_src>

<mosaic_0001>
module attributes {stable_mosaic.version = 11 : i64} {
  func.func @_label_smoothing_kernel(%arg0: i32, %arg1: i32, %arg2: memref<8x128xf32, #tpu.memory_space<vmem>>, %arg3: memref<8x1xi32, #tpu.memory_space<vmem>>, %arg4: memref<8x128xf32, #tpu.memory_space<vmem>>, %arg5: memref<1x1xf32, #tpu.memory_space<vmem>>) attributes {dimension_semantics = [#tpu.dimension_semantics<parallel>, #tpu.dimension_semantics<arbitrary>], iteration_bounds = array<i64: 2, 2>, scalar_prefetch = 0 : i64, scratch_operands = 1 : i64, tpu.core_type = #tpu.core_type<tc>, window_params = [{transform_indices = @transform_0, window_bounds = array<i64: 8, 128>}, {transform_indices = @transform_1, window_bounds = array<i64: 8, 1>}, {transform_indices = @transform_2, window_bounds = array<i64: 8, 128>}]} {
    %c0_i32 = arith.constant 0 : i32
    %0 = arith.cmpi eq, %arg1, %c0_i32 : i32
    %1 = arith.extui %0 : i1 to i32
    %c0_i32_0 = arith.constant 0 : i32
    %2 = arith.cmpi ne, %1, %c0_i32_0 : i32
    scf.if %2 {
      %cst_19 = arith.constant 0.000000e+00 : f32
      %60 = vector.broadcast %cst_19 : f32 to vector<1x1xf32>
      %c0_20 = arith.constant 0 : index
      %c0_21 = arith.constant 0 : index
      %61 = vector.load %arg5[%c0_20, %c0_21] : memref<1x1xf32, #tpu.memory_space<vmem>>, vector<1x1xf32>
      tpu.vector_store %arg5[%c0_20, %c0_21], %60 {strides = array<i32>} : memref<1x1xf32, #tpu.memory_space<vmem>>, vector<1x1xf32>,
    } else {
    }
    %c0 = arith.constant 0 : index
    %c0_1 = arith.constant 0 : index
    %3 = vector.load %arg2[%c0, %c0_1] : memref<8x128xf32, #tpu.memory_space<vmem>>, vector<8x128xf32>
    %c0_2 = arith.constant 0 : index
    %c0_3 = arith.constant 0 : index
    %4 = vector.load %arg3[%c0_2, %c0_3] : memref<8x1xi32, #tpu.memory_space<vmem>>, vector<8x1xi32>
    %5 = tpu.iota {dimensions = array<i32: 1>} : vector<1x128xi32>
    %c32_i32 = arith.constant 32 : i32
    %6 = vector.broadcast %c32_i32 : i32 to vector<1x128xi32>
    %7 = arith.cmpi slt, %5, %6 : vector<1x128xi32>
    %cst = arith.constant -1.000000e+30 : f32
    %8 = vector.shape_cast %7 : vector<1x128xi1> to vector<1x128xi1>
    %9 = vector.broadcast %8 : vector<1x128xi1> to vector<8x128xi1>
    %10 = vector.broadcast %cst : f32 to vector<8x128xf32>
    %11 = arith.select %9, %3, %10 : vector<8x128xi1>, vector<8x128xf32>
    %cst_4 = arith.constant dense<0xFF800000> : vector<8xf32>
    %12 = vector.multi_reduction <maximumf>, %11, %cst_4 [1] : vector<8x128xf32> to vector<8xf32>
    %13 = vector.shape_cast %12 : vector<8xf32> to vector<8x1xf32>
    %14 = vector.broadcast %13 : vector<8x1xf32> to vector<8x128xf32>
    %15 = arith.subf %11, %14 : vector<8x128xf32>
    %16 = math.exp %15 : vector<8x128xf32>
    %cst_5 = arith.constant dense<0.000000e+00> : vector<8xf32>
    %17 = vector.multi_reduction <add>, %16, %cst_5 [1] : vector<8x128xf32> to vector<8xf32>
    %18 = vector.shape_cast %17 : vector<8xf32> to vector<8x1xf32>
    %19 = math.log %18 : vector<8x1xf32>
    %20 = vector.broadcast %5 : vector<1x128xi32> to vector<8x128xi32>
    %21 = vector.broadcast %4 : vector<8x1xi32> to vector<8x128xi32>
    %22 = arith.cmpi eq, %20, %21 : vector<8x128xi32>
    %cst_6 = arith.constant 0.000000e+00 : f32
    %23 = vector.broadcast %cst_6 : f32 to vector<8x128xf32>
    %24 = arith.select %22, %15, %23 : vector<8x128xi1>, vector<8x128xf32>
    %cst_7 = arith.constant dense<0.000000e+00> : vector<8xf32>
    %25 = vector.multi_reduction <add>, %24, %cst_7 [1] : vector<8x128xf32> to vector<8xf32>
    %26 = vector.shape_cast %25 : vector<8xf32> to vector<8x1xf32>
    %cst_8 = arith.constant 0.899999976 : f32
    %27 = vector.broadcast %cst_8 : f32 to vector<8x1xf32>
    %28 = arith.mulf %27, %26 : vector<8x1xf32>
    %29 = arith.subf %19, %28 : vector<8x1xf32>
    %cst_9 = arith.constant 0.000000e+00 : f32
    %30 = vector.shape_cast %7 : vector<1x128xi1> to vector<1x128xi1>
    %31 = vector.broadcast %30 : vector<1x128xi1> to vector<8x128xi1>
    %32 = vector.broadcast %cst_9 : f32 to vector<8x128xf32>
    %33 = arith.select %31, %15, %32 : vector<8x128xi1>, vector<8x128xf32>
    %cst_10 = arith.constant dense<0.000000e+00> : vector<8xf32>
    %34 = vector.multi_reduction <add>, %33, %cst_10 [1] : vector<8x128xf32> to vector<8xf32>
    %35 = vector.shape_cast %34 : vector<8xf32> to vector<8x1xf32>
    %cst_11 = arith.constant 3.125000e-03 : f32
    %36 = vector.broadcast %cst_11 : f32 to vector<8x1xf32>
    %37 = arith.mulf %36, %35 : vector<8x1xf32>
    %38 = arith.subf %29, %37 : vector<8x1xf32>
    %c2_i32 = arith.constant 2 : i32
    %39 = arith.muli %arg0, %c2_i32 : i32
    %40 = arith.addi %39, %arg1 : i32
    %c8_i32 = arith.constant 8 : i32
    %41 = arith.muli %40, %c8_i32 : i32
    %42 = tpu.iota {dimensions = array<i32: 0>} : vector<8x1xi32>
    %43 = vector.broadcast %41 : i32 to vector<8x1xi32>
    %44 = arith.addi %43, %42 : vector<8x1xi32>
    %c20_i32 = arith.constant 20 : i32
    %45 = vector.broadcast %c20_i32 : i32 to vector<8x1xi32>
    %46 = arith.cmpi slt, %44, %45 : vector<8x1xi32>
    %cst_12 = arith.constant 0.000000e+00 : f32
    %47 = vector.broadcast %cst_12 : f32 to vector<8x1xf32>
    %48 = arith.select %46, %38, %47 : vector<8x1xi1>, vector<8x1xf32>
    %c0_13 = arith.constant 0 : index
    %c0_14 = arith.constant 0 : index
    %49 = vector.load %arg5[%c0_13, %c0_14] : memref<1x1xf32, #tpu.memory_space<vmem>>, vector<1x1xf32>
    %50 = vector.shape_cast %48 : vector<8x1xf32> to vector<1x8x1xf32>
    %cst_15 = arith.constant dense<0.000000e+00> : vector<1xf32>
    %51 = vector.multi_reduction <add>, %50, %cst_15 [1, 2] : vector<1x8x1xf32> to vector<1xf32>
    %52 = vector.shape_cast %51 : vector<1xf32> to vector<1x1x1xf32>
    %53 = vector.extract %52[0, 0, 0] : f32 from vector<1x1x1xf32>
    %54 = vector.broadcast %53 : f32 to vector<1x1xf32>
    %55 = arith.addf %49, %54 : vector<1x1xf32>
    %c0_16 = arith.constant 0 : index
    %c0_17 = arith.constant 0 : index
    %56 = vector.load %arg5[%c0_16, %c0_17] : memref<1x1xf32, #tpu.memory_space<vmem>>, vector<1x1xf32>
    tpu.vector_store %arg5[%c0_16, %c0_17], %55 {strides = array<i32>} : memref<1x1xf32, #tpu.memory_space<vmem>>, vector<1x1xf32>,
    %c1_i32 = arith.constant 1 : i32
    %57 = arith.cmpi eq, %arg1, %c1_i32 : i32
    %58 = arith.extui %57 : i1 to i32
    %c0_i32_18 = arith.constant 0 : i32
    %59 = arith.cmpi ne, %58, %c0_i32_18 : i32
    scf.if %59 {
      %c0_19 = arith.constant 0 : index
      %c0_20 = arith.constant 0 : index
      %60 = vector.load %arg5[%c0_19, %c0_20] : memref<1x1xf32, #tpu.memory_space<vmem>>, vector<1x1xf32>
      %61 = vector.shape_cast %60 : vector<1x1xf32> to vector<1x1xf32>
      %62 = vector.broadcast %61 : vector<1x1xf32> to vector<8x128xf32>
      %c0_21 = arith.constant 0 : index
      %c0_22 = arith.constant 0 : index
      %63 = vector.load %arg4[%c0_21, %c0_22] : memref<8x128xf32, #tpu.memory_space<vmem>>, vector<8x128xf32>
      tpu.vector_store %arg4[%c0_21, %c0_22], %62 {strides = array<i32>} : memref<8x128xf32, #tpu.memory_space<vmem>>, vector<8x128xf32>,
    } else {
    }
    return
  }
  func.func @transform_0(%arg0: i32, %arg1: i32) -> (i32, i32) {
    %c2_i32 = arith.constant 2 : i32
    %0 = arith.muli %arg0, %c2_i32 : i32
    %1 = arith.addi %0, %arg1 : i32
    %c0_i32 = arith.constant 0 : i32
    %c0_i32_0 = arith.constant 0 : i32
    return %1, %c0_i32 : i32, i32
  }
  func.func @transform_1(%arg0: i32, %arg1: i32) -> (i32, i32) {
    %c2_i32 = arith.constant 2 : i32
    %0 = arith.muli %arg0, %c2_i32 : i32
    %1 = arith.addi %0, %arg1 : i32
    %c0_i32 = arith.constant 0 : i32
    %c0_i32_0 = arith.constant 0 : i32
    return %1, %c0_i32 : i32, i32
  }
  func.func @transform_2(%arg0: i32, %arg1: i32) -> (i32, i32) {
    %c0_i32 = arith.constant 0 : i32
    %c0_i32_0 = arith.constant 0 : i32
    return %arg0, %c0_i32 : i32, i32
  }
}

</mosaic_0001>

<bundles_post_ra>
// kernel: tpu_custom_call.1
= control target key start
LH: loop header
LB: loop body
LE: loop exit
PB: predicated region body
PF: predicated region fallthrough
CT: control target
= control target key end

     0   :  { %7 = vsyncpa [#allocation4], 0  ;;  %s725_s0 = inlined_call_operand.vmem [shape: f32[32,128], index: 0, kind: input, shape index: {}]   ;;  %s726_s1 = inlined_call_operand.vmem [shape: s32[32,1], index: 1, kind: input, shape index: {}]   ;;  %s727_s2 = inlined_call_operand.hbm [shape: f32[16,128], index: 2, kind: output, shape index: {}]  }
   0x1   :  { %9 = vsyncpa [#allocation4 + $0x1], 0  ;;  %s587_s9 = smov 0   ;;  %s589_s10 = smov 0  }
   0x2   :  { %s591_s11 = smov 0   ;;  %s593_s12 = smov 0  }
   0x3   :  { %s595_s13 = smov 0   ;;  %s597_s14 = smov 0  }
   0x4   :  { %s599_s15 = smov 0   ;;  %s601_s16 = smov 0  }
   0x5 LB: > { %s368_s17 = sadd.s32 4294967295, %s567_s16   ;;  %s369_s18 = sadd.s32 4294967294, %s567_s16   ;;  %s567_s16 = sphi %s601_s16, %s15_s16   ;;  %s563_s15 = sphi %s599_s15, %s736_s15   ;;  %s559_s14 = sphi %s597_s14, %s735_s14   ;;  %s555_s13 = sphi %s595_s13, %s734_s13   ;;  %s551_s12 = sphi %s593_s12, %s733_s12   ;;  %s547_s11 = sphi %s591_s11, %s732_s11   ;;  %s543_s10 = sphi %s589_s10, %s731_s10   ;;  %s539_s9 = sphi %s587_s9, %s730_s9  }
   0x6   : > { %s24_s19 = sadd.s32 1, %s559_s14  ;;  %s27_s20 = sadd.s32 1, %s563_s15 }
   0x7   : > { %p25_p0 = scmp.ge.s32.totalorder %s24_s19, 2  ;;  %p104_p1 = scmp.ne.s32.totalorder %s547_s11, %s543_s10 }
   0x8   : > { %p105_p2 = scmp.eq.s32.totalorder %s368_s17, 3  ;;  %p110_p4 = scmp.ne.s32.totalorder %s543_s10, %s539_s9 }
   0x9   : > { %s738_s19 = smov (%p25_p0, %s24_s19), 0  ;;  %s740_s20 = smov (!%p25_p0, %s27_s20), %s563_s15 }
   0xa   : > { %p636_p3 = por %p105_p2, %p104_p1  ;;  %p29_p5 = scmp.ge.s32.totalorder %s740_s20, 2 }
   0xb   : > { %p111_p6 = scmp.eq.s32.totalorder %s369_s18, 3  ;;  %p376_p7 = scmp.ge.s32.totalorder %s567_s16, 1 }
   0xc   : > { %p151_p8 = scmp.lt.s32.totalorder %s567_s16, 5  ;;  %s742_s20 = smov (%p29_p5, %s740_s20), 0 }
   0xd   : > { %p646_p9 = por %p111_p6, %p110_p4  ;;  %s91_s23 = ssub.s32 %s563_s15, %s742_s20 }
   0xe   : > { %p152_p10 = pnand %p376_p7, %p151_p8  ;;  %s94_s24 = sadd.s32 1, %s547_s11 }
   0xf   : > { %p92_p11 = scmp.eq.s32.totalorder %s91_s23, 0  ;;  %s177_s26 = sand.u32 (!%p152_p10), 1, %s543_s10  }
  0x10   : > { %155 = sbr.rel (%p152_p10) target bundleno = 616 (0x268), region = 28  ;;  %s378_s27 = sshll.u32 (!%p152_p10), %s555_s13, 1 }
  0x11   : > { %s654_s25 = scalar_select %p92_p11, %s547_s11, %s94_s24  }
  0x12   : > { %s660_s28 = sshll.u32 (!%p152_p10), %s177_s26, 3  ;;  %s663_s29 = sadd.s32 (!%p152_p10), %s551_s12, %s378_s27 }
  0x13   : > { %p182_p12 = scmp.lt.s32.totalorder (!%p152_p10), %s663_s29, 3  ;;  %s179_s18 = scalar_lea.vmem (!%p152_p10), [#allocation3], %s660_s28 }
  0x14   : > { %p382_p13 = scmp.ne.s32.totalorder (!%p152_p10), %s551_s12, 0 }
  0x15   : > { %s183_s30 = scalar_select %p182_p12, %s663_s29, 3 }
  0x16   : > { %199 = sbr.rel (%p382_p13) target bundleno = 29 (0x1d), region = 32 }
  0x17   : > { %s379_s3 = sshll.u32 %s183_s30, 3 }
  0x18   : > { %s185_s6 = scalar_lea.vmem %s725_s0, %s379_s3  ;;  %s193_s17 = scalar_lea.vmem %s726_s1, %s379_s3 }
  0x1b   : > { %vm200_vm0 = vcmask 0   ;;  %v569_v0 = vmov 0.0  }
  0x1c   : > { %201 = vst.msk [vmem:[#allocation2] sm:$0x1] %vm200_vm0, %v569_v0 }
  0x1d PF: > { %v204_v1 = vlaneseq  ;;  %v570_v2 = vmov 0   ;;  %v202_v3 = vld [vmem:[%s185_s6] sm:$0xff]  ;;  %s384_s23 = sshll.u32 %s663_s29, 3  ;;  %vm243_vm4 = vcmask 7168   ;;  %vm256_vm5 = vcmask 0   ;;  %p385_p0 = scmp.ne.s32.totalorder %s551_s12, 1 }
  0x1e   : > { %466 = vset.pattern.permute.xlu0 %v570_v2  ;;  %v203_v6 = vld [vmem:[%s193_s17] sm:$0xff]  ;;  %v238_v16 = vstv %s384_s23 }
  0x1f   : > { %v205_v4 = vand.u32 127, %v204_v1  ;;  %v237_v15 = vshrl.u32 %v204_v1, 7 }
  0x21   : > { %vm206_vm1 = vcmp.lt.s32.totalorder %v205_v4, 32  ;;  %v239_v20 = vadd.s32 %v238_v16, %v237_v15 }
  0x22   : > { %v209_v5 = vsel %vm206_vm1, %v202_v3, -1e+30 }
  0x23   : > { %210 = vmax.xlane.f32.xlu0 %v209_v5  ;;  %vm240_vm3 = vcmp.lt.s32.totalorder %v239_v20, 20  ;;  %v242_v35 = vld [vmem:[#allocation2] sm:$0x1] }
  0x37   : > { %220 = vperm.xlu0 %466, %v203_v6  }
  0x96   : > { %v211_v7 = vpop.xlane.xlu0 %210 }
  0x97   : > { %v212_v8 = vsub.f32 %v209_v5, %v211_v7 }
  0x99   : > { %v228_v9 = vsel %vm206_vm1, %v212_v8, 0.0  ;;  %v213_v10 = vmul.f32 1.442695, %v212_v8 }
  0x9a   : > { %229 = vadd.xlane.f32.xlu2 %v228_v9 }
  0x9b   : > { %467 = vpow2.f32 %v213_v10 }
  0xa1   : > { %v468_v11 = vpop.eup %467 }
  0xa2   : > { %215 = vadd.xlane.f32.xlu1 %v468_v11 }
  0xa9   : > { %v221_v12 = vpop.permute.xlu0 %220 }
  0xaa   : > { %vm222_vm2 = vcmp.eq.s32.totalorder %v205_v4, %v221_v12 }
  0xab   : > { %v223_v13 = vsel %vm222_vm2, %v212_v8, 0.0 }
  0xac   : > { %224 = vadd.xlane.f32.xlu1 %v223_v13 }
 0x10d   : > { %v230_v18 = vpop.xlane.xlu2 %229 }
 0x10e   : > { %v231_v23 = vmul.f32 0.003125, %v230_v18 }
 0x115   : > { %v216_v14 = vpop.xlane.xlu1 %215 }
 0x116   : > { %469 = vlog2.f32 %v216_v14 }
 0x11c   : > { %v470_v17 = vpop.eup %469 }
 0x11d   : > { %v218_v21 = vmul.f32 0.6931472, %v470_v17 }
 0x11f   : > { %v225_v19 = vpop.xlane.xlu1 %224 }
 0x120   : > { %v226_v22 = vmul.f32 0.9, %v225_v19 }
 0x122   : > { %v227_v24 = vsub.f32 %v218_v21, %v226_v22 }
 0x124   : > { %v232_v25 = vsub.f32 %v227_v24, %v231_v23 }
 0x126   : > { %v241_v26 = vsel %vm240_vm3, %v232_v25, 0.0 }
 0x127   : > { %v244_v27 = vsel %vm243_vm4, %v241_v26, 0.0 }
 0x128   : > { %245 = vadd.xlane.f32.xlu2 %v244_v27 }
 0x19b   : > { %v246_v28 = vpop.xlane.xlu2 %245 }
 0x19c   : > { %v247_v29 = vrot.slane %v246_v28, 4 }
 0x19e   : > { %v248_v30 = vadd.f32 %v247_v29, %v246_v28 }
 0x1a0   : > { %v249_v31 = vrot.slane %v248_v30, 2 }
 0x1a2   : > { %v250_v32 = vadd.f32 %v249_v31, %v248_v30 }
 0x1a4   : > { %v251_v33 = vrot.slane %v250_v32, 1 }
 0x1a6   : > { %v252_v34 = vadd.f32 %v251_v33, %v250_v32 }
 0x1a8   : > { %390 = vpush %v252_v34 }
 0x1d9   : > { %s391_s24 = spop %390  ;;  %261 = sbr.rel (%p385_p0) target bundleno = 601 (0x259), region = 36 }
 0x1da   : > { %v254_v36 = vstv %s391_s24 }
 0x1db   : > { %v255_v37 = vadd.f32 %v254_v36, %v242_v35 }
 0x1dd   : > { %257 = vst.msk [vmem:[#allocation2] sm:$0x1] %vm256_vm5, %v255_v37 }
 0x1de   : > { %v571_v39 = vmov 0  }
 0x1df   : > { %471 = vset.pattern.permute.xlu0 %v571_v39 }
 0x1e4   : > { %v472_v38 = vld [vmem:[#allocation2] ss:$0 sm:$0xff] }
 0x1e5   : > { %266 = vperm.xlu0 %471, %v472_v38  }
 0x257   : > { %v267_v40 = vpop.permute.xlu0 %266 }
 0x258   : > { %269 = vst [vmem:[%s179_s18] sm:$0xff] %v267_v40 }
 0x259 PF: > { %s387_s27 = sshll.u32 %s555_s13, 3  ;;  %s283_s12 = sshll.u32 %s179_s18, 4  ;;  %s284_s12 = int_to_ptr.vmem [resolvable:$true] %s283_s12 }
 0x25a   : > { %s281_s3 = scalar_lea.hbm %s727_s2, %s387_s27  ;;  %s271_s5 = scalar_lea.sflag [#allocation4], %s177_s26 }
 0x25b   : > { %s285_s4 = sshll.u32 %s281_s3, 4  ;;  %s493_s17 = scalar_lea.hbm %s727_s2, 16  ;;  %s286_s4 = int_to_ptr.hbm [resolvable:$true] %s285_s4 }
 0x25c   : > { %s487_s6 = sshra.s32 %s286_s4, 4  ;;  %s488_s6 = int_to_ptr.hbm [resolvable:$true] %s487_s6 }
 0x25d   : > { %s489_s7 = scalar_lea.hbm %s488_s6, 8  ;;  %p494_p5 = scmp.lt.s32.totalorder %s488_s6, %s727_s2 }
 0x25e   : > { %p490_p1 = scmp.ne.s32.totalorder %s488_s6, %s489_s7  ;;  %p495_p6 = scmp.lt.s32.totalorder %s493_s17, %s489_s7 }
 0x260   : > { %p491_p2 = pnand %p490_p1, %p636_p3  ;;  %p496_p7 = por %p495_p6, %p494_p5 }
 0x262   : > { %p492_p4 = pneg %p491_p2 }
 0x264   : > { %p497_p8 = pnand %p496_p7, %p492_p4 }
 0x266   : > { %500 = shalt.err (!%p497_p8)
}
 0x267   : > { %392 = dma.vmem_to_hbm [thread:$0]  (%p636_p3), %s284_s12, 128, %s286_s4, %s271_s5  }
 0x268 PF: > { %p398_p10 = scmp.ge.s32.totalorder %s567_s16, 2  ;;  %s297_s26 = sand.u32 1, %s539_s9  }
 0x269   : > { %s298_s28 = scalar_lea.sflag [#allocation4], %s297_s26 }
 0x26a   : > { %p395_p11 = pnand %p398_p10, %p646_p9 }
 0x26c   : > { %p396_p12 = pneg %p395_p11 }
 0x26e   : > { %534 = dma.done.wait (%p396_p12), %s298_s28, 128  }
 0x26f   : > { %536 = vsyncadd (%p396_p12), %s298_s28, 4294967168  ;;  %s15_s16 = sadd.s32 1, %s567_s16   ;;  %s730_s9 = smov %s543_s10 }
 0x270   : > { %p12_p13 = scmp.ge.s32.totalorder %s15_s16, 6   ;;  %s731_s10 = smov %s547_s11 }
 0x271   : > { %s732_s11 = smov %s654_s25  ;;  %s733_s12 = smov %s559_s14 }
 0x272   : > { %s734_s13 = smov %s563_s15  ;;  %s735_s14 = smov %s738_s19 }
 0x273   : > { %s736_s15 = smov %s742_s20  ;;  %14 = sbr.rel (!%p12_p13) target bundleno = 5 (0x5), region = 74 }
 0x278   :  { %304 = vsyncpa [#allocation4], 1 }
 0x279   :  { %306 = vsyncpa [#allocation4 + $0x1], 1 }

</bundles_post_ra>
